<compile_context>
chip_gen: v7x
topology: tpu7x:2x2x1
jax: 0.10.0
libtpu: 0.0.40
codegen_flags: <defaults>
</compile_context>

<pallas_src>
import math

import jax
import jax.numpy as jnp
from jax import lax
from jax.experimental import pallas as pl
from jax.experimental.pallas import tpu as pltpu

# ---- problem sizes (small, consistent with the module) ---------------------
B = 2          # batch
LQ = 8         # query sequence length (structure tokens)
LK = 8         # key/value sequence length (language tokens)
NODE_DIM = 16  # node_embed_dim
E = 32         # lm_embed_dim
H = 4          # num_attention_heads
DH = E // H    # head dim
HID = E // 2   # Bottleneck hidden dim (embed_dim // 2)

QROWS = B * LQ                 # 16
KROWS = B * LK                 # 16
OFF_Q = 0                      # activation-slab row offsets
OFF_K = QROWS                  # 16
OFF_V = QROWS + E              # 48
ACT_ROWS = QROWS + E + KROWS   # 64

# weight-slab page indices
PG_Q0 = 0      # pages 0..3: per-head [Wq_eff_h ; bq_eff_h] (ones-column fold)
PG_KT = 4      # Wk^T
PG_VO0 = 5     # pages 5..8: per-head Wv[:,h] @ Wo[h,:]
PG_W1 = 9      # bottleneck fc1 (padded to (E,E))
PG_W2 = 10     # bottleneck fc2 (padded to (E,E))
PG_BIAS = 11   # row 0: bo_eff, row 1: b1(pad), row 2: b2, rows 8:24 cols 0:16: mask
N_PAGES = 12


def adapter_kernel(x_ref, w_ref, out_ref):
    f32 = jnp.float32
    q_aug = x_ref[OFF_Q:OFF_Q + QROWS, :]            # (16, 32) = [q | 1 | 0...]
    kT = x_ref[OFF_K:OFF_K + E, 0:KROWS]             # (32, 16) feature-major keys
    v = x_ref[OFF_V:OFF_V + KROWS, :]                # (16, 32)

    bo_row = w_ref[PG_BIAS, 0:1, :]                  # (1, 32) bo + bv@Wo
    b1_row = w_ref[PG_BIAS, 1:2, :]                  # (1, 32) (cols HID: are zero)
    b2_row = w_ref[PG_BIAS, 2:3, :]                  # (1, 32)
    mask = w_ref[PG_BIAS, 8:8 + QROWS, 0:KROWS]      # (16, 16) additive block-diag

    # K in-projection in transposed layout (features on sublanes); k bias is
    # row-constant in the scores and cancels in softmax -> dropped.
    kpT = jnp.dot(w_ref[PG_KT], kT, preferred_element_type=f32)     # (32, 16)

    # per-head scores: Q_h from pre-sliced weight pages (bias folded via the
    # ones column), K_h^T as an aligned sublane slice -> standard matmul dims,
    # no transposes, no lane-offset relayouts.
    s_blocks = []
    for h in range(H):                               # static unroll (H = 4)
        q_h = jnp.dot(q_aug, w_ref[PG_Q0 + h, :, 0:DH],
                      preferred_element_type=f32)                    # (16, 8)
        s_h = jnp.dot(q_h, kpT[h * DH:(h + 1) * DH, :],
                      preferred_element_type=f32)                    # (16, 16)
        s_blocks.append(s_h + mask)

    # one batched softmax across all heads (sublane-stacked scores)
    s_all = jnp.concatenate(s_blocks, axis=0)                        # (64, 16)
    s_all = s_all - jnp.max(s_all, axis=-1, keepdims=True)
    p = jnp.exp(s_all)
    inv = pl.reciprocal(jnp.sum(p, axis=-1, keepdims=True), approx=False)
    p = p * inv

    # value/output projection with per-head Wv.Wo fold; output bias pre-added.
    attn = jnp.broadcast_to(bo_row, (QROWS, E))
    for h in range(H):
        vo_h = jnp.dot(v, w_ref[PG_VO0 + h], preferred_element_type=f32)   # (16, 32)
        attn = attn + jnp.dot(p[h * QROWS:(h + 1) * QROWS, :], vo_h,
                              preferred_element_type=f32)

    # Bottleneck: fc1 -> exact GELU -> fc2 -> +residual
    # (w1/b1 zero-padded cols and w2 zero-padded rows => padded lanes are
    #  exactly 0 through GELU and contribute nothing to h2)
    h1 = jnp.dot(attn, w_ref[PG_W1], preferred_element_type=f32) + b1_row
    g = 0.5 * h1 * (1.0 + lax.erf(h1 * jnp.float32(1.0 / math.sqrt(2.0))))
    h2 = jnp.dot(g, w_ref[PG_W2], preferred_element_type=f32) + b2_row
    out_ref[...] = (h2 + attn).astype(out_ref.dtype)


def pack_params(p):
    """Offline weight folding + packing into a single (12, E, E) slab (1 DMA).

    Folds: query_project o q in-projection o softmax scale (per head, with the
    bias as an extra contraction row), Wv.Wo per head, bv.Wo into the output
    bias, and the block-diagonal attention mask.
    """
    hp = lax.Precision.HIGHEST
    scale = jnp.float32(1.0 / math.sqrt(DH))
    wq_eff = jnp.dot(p["wqp"], p["wq"], precision=hp) * scale            # (NODE_DIM, E)
    bq_eff = (jnp.dot(p["bqp"], p["wq"], precision=hp) + p["bq"]) * scale  # (1, E)
    bo_eff = p["bo"] + jnp.dot(p["bv"], p["wo"], precision=hp)           # (1, E)

    w = jnp.zeros((N_PAGES, E, E), jnp.float32)
    for h in range(H):
        lo, hi = h * DH, (h + 1) * DH
        w = w.at[PG_Q0 + h, :NODE_DIM, :DH].set(wq_eff[:, lo:hi])
        w = w.at[PG_Q0 + h, NODE_DIM, :DH].set(bq_eff[0, lo:hi])         # ones-column row
        w = w.at[PG_VO0 + h].set(
            jnp.dot(p["wv"][:, lo:hi], p["wo"][lo:hi, :], precision=hp))
    w = w.at[PG_KT].set(p["wk"].T)
    w = w.at[PG_W1, :, :HID].set(p["w1"])
    w = w.at[PG_W2, :HID, :].set(p["w2"])
    w = w.at[PG_BIAS, 0, :].set(bo_eff[0])
    w = w.at[PG_BIAS, 1, :HID].set(p["b1"][0])
    w = w.at[PG_BIAS, 2, :].set(p["b2"][0])

    # additive block-diagonal mask: queries of batch b attend only to keys of batch b
    row_b = jnp.arange(QROWS)[:, None] // LQ
    col_b = jnp.arange(KROWS)[None, :] // LK
    mask = jnp.where(row_b == col_b, 0.0, -1e30).astype(jnp.float32)
    w = w.at[PG_BIAS, 8:8 + QROWS, :KROWS].set(mask)
    return w


def structural_adapter(query, key, value, w_packed):
    """query: (B, LQ, NODE_DIM); key/value: (B, LK, E) -> (B, LQ, E)."""
    qf = query.reshape(QROWS, NODE_DIM).astype(jnp.float32)
    kT = key.reshape(KROWS, E).T.astype(jnp.float32)          # (E, KROWS) feature-major
    vf = value.reshape(KROWS, E).astype(jnp.float32)

    # single packed activation slab (one input DMA): [q|1|0 ; k^T pad ; v]
    q_aug = jnp.concatenate(
        [qf, jnp.ones((QROWS, 1), jnp.float32),
         jnp.zeros((QROWS, E - NODE_DIM - 1), jnp.float32)], axis=1)     # (16, E)
    k_pad = jnp.concatenate(
        [kT, jnp.zeros((E, E - KROWS), jnp.float32)], axis=1)            # (E, E)
    acts = jnp.concatenate([q_aug, k_pad, vf], axis=0)                   # (64, E)

    out = pl.pallas_call(
        adapter_kernel,
        out_shape=jax.ShapeDtypeStruct((QROWS, E), jnp.float32),
        in_specs=[pl.BlockSpec(memory_space=pltpu.MemorySpace.VMEM),
                  pl.BlockSpec(memory_space=pltpu.MemorySpace.VMEM)],
        out_specs=pl.BlockSpec(memory_space=pltpu.MemorySpace.VMEM),
    )(acts, w_packed)
    return out.reshape(B, LQ, E)


def reference(query, key, value, p):
    """Pure-JAX reference (matches the PyTorch module's forward)."""
    q = query @ p["wqp"] + p["bqp"]
    qp = q @ p["wq"] + p["bq"]
    kp = key @ p["wk"] + p["bk"]
    vp = value @ p["wv"] + p["bv"]
    qh = qp.reshape(B, LQ, H, DH)
    kh = kp.reshape(B, LK, H, DH)
    vh = vp.reshape(B, LK, H, DH)
    s = jnp.einsum("bqhd,bkhd->bhqk", qh, kh) / math.sqrt(DH)
    w = jax.nn.softmax(s, axis=-1)
    ctx = jnp.einsum("bhqk,bkhd->bqhd", w, vh).reshape(B, LQ, E)
    attn = ctx @ p["wo"] + p["bo"]
    h1 = attn @ p["w1"] + p["b1"]
    g = 0.5 * h1 * (1.0 + lax.erf(h1 / math.sqrt(2.0)))
    return g @ p["w2"] + p["b2"] + attn


def make_params(key):
    ks = jax.random.split(key, 14)
    sc = 0.1
    def w(k, shape):
        return (sc * jax.random.normal(k, shape)).astype(jnp.float32)
    return {
        # weights stored as (in_features, out_features); biases as (1, out)
        "wqp": w(ks[0], (NODE_DIM, E)), "bqp": w(ks[1], (1, E)),
        "wq":  w(ks[2], (E, E)),        "bq":  w(ks[3], (1, E)),
        "wk":  w(ks[4], (E, E)),        "bk":  w(ks[5], (1, E)),
        "wv":  w(ks[6], (E, E)),        "bv":  w(ks[7], (1, E)),
        "wo":  w(ks[8], (E, E)),        "bo":  w(ks[9], (1, E)),
        "w1":  w(ks[10], (E, HID)),     "b1":  w(ks[11], (1, HID)),
        "w2":  w(ks[12], (HID, E)),     "b2":  w(ks[13], (1, E)),
    }


if __name__ == "__main__":
    root = jax.random.PRNGKey(0)
    kq, kk, kv, kp = jax.random.split(root, 4)
    query = jax.random.normal(kq, (B, LQ, NODE_DIM), dtype=jnp.float32)
    key = jax.random.normal(kk, (B, LK, E), dtype=jnp.float32)
    value = jax.random.normal(kv, (B, LK, E), dtype=jnp.float32)
    params = make_params(kp)

    w_packed = pack_params(params)       # one-time weight fold + pack
    out = structural_adapter(query, key, value, w_packed)
    out = jax.block_until_ready(out)

    ref = reference(query, key, value, params)
    assert out.shape == (B, LQ, E)
    # tolerance covers offline weight-fold reassociation and MXU f32 rounding
    assert jnp.allclose(out, ref, rtol=3e-3, atol=3e-3), float(jnp.max(jnp.abs(out - ref)))
    print("KERNEL_OK")
</pallas_src>

<mosaic_0001>
module attributes {stable_mosaic.version = 11 : i64} {
  func.func @adapter_kernel(%arg0: memref<64x32xf32, #tpu.memory_space<vmem>>, %arg1: memref<12x32x32xf32, #tpu.memory_space<vmem>>, %arg2: memref<16x32xf32, #tpu.memory_space<vmem>>) attributes {dimension_semantics = [], scalar_prefetch = 0 : i64, scratch_operands = 0 : i64, tpu.core_type = #tpu.core_type<tc>} {
    %c0 = arith.constant 0 : index
    %c0_0 = arith.constant 0 : index
    %0 = vector.load %arg0[%c0, %c0_0] : memref<64x32xf32, #tpu.memory_space<vmem>>, vector<16x32xf32>
    %c16 = arith.constant 16 : index
    %c0_1 = arith.constant 0 : index
    %1 = vector.load %arg0[%c16, %c0_1] : memref<64x32xf32, #tpu.memory_space<vmem>>, vector<32x16xf32>
    %c48 = arith.constant 48 : index
    %c0_2 = arith.constant 0 : index
    %2 = vector.load %arg0[%c48, %c0_2] : memref<64x32xf32, #tpu.memory_space<vmem>>, vector<16x32xf32>
    %c11 = arith.constant 11 : index
    %c0_3 = arith.constant 0 : index
    %c0_4 = arith.constant 0 : index
    %3 = vector.load %arg1[%c11, %c0_3, %c0_4] : memref<12x32x32xf32, #tpu.memory_space<vmem>>, vector<1x1x32xf32>
    %4 = vector.shape_cast %3 : vector<1x1x32xf32> to vector<1x32xf32>
    %c11_5 = arith.constant 11 : index
    %c1 = arith.constant 1 : index
    %c0_6 = arith.constant 0 : index
    %5 = vector.load %arg1[%c11_5, %c1, %c0_6] : memref<12x32x32xf32, #tpu.memory_space<vmem>>, vector<1x1x32xf32>
    %6 = vector.shape_cast %5 : vector<1x1x32xf32> to vector<1x32xf32>
    %c11_7 = arith.constant 11 : index
    %c2 = arith.constant 2 : index
    %c0_8 = arith.constant 0 : index
    %7 = vector.load %arg1[%c11_7, %c2, %c0_8] : memref<12x32x32xf32, #tpu.memory_space<vmem>>, vector<1x1x32xf32>
    %8 = vector.shape_cast %7 : vector<1x1x32xf32> to vector<1x32xf32>
    %c11_9 = arith.constant 11 : index
    %c8 = arith.constant 8 : index
    %c0_10 = arith.constant 0 : index
    %9 = vector.load %arg1[%c11_9, %c8, %c0_10] : memref<12x32x32xf32, #tpu.memory_space<vmem>>, vector<1x16x16xf32>
    %10 = vector.shape_cast %9 : vector<1x16x16xf32> to vector<16x16xf32>
    %c4 = arith.constant 4 : index
    %c0_11 = arith.constant 0 : index
    %c0_12 = arith.constant 0 : index
    %11 = vector.load %arg1[%c4, %c0_11, %c0_12] : memref<12x32x32xf32, #tpu.memory_space<vmem>>, vector<1x32x32xf32>
    %12 = vector.shape_cast %11 : vector<1x32x32xf32> to vector<32x32xf32>
    %cst = arith.constant dense<0.000000e+00> : vector<32x16xf32>
    %13 = tpu.matmul %12, %1, %cst {dimension_numbers = #tpu.dot_dimension_numbers<[1], [0], [0], [1], [0, 0, 1, 1], [], []>} : vector<32x32xf32>, vector<32x16xf32>, vector<32x16xf32> -> vector<32x16xf32>
    %c0_13 = arith.constant 0 : index
    %c0_14 = arith.constant 0 : index
    %c0_15 = arith.constant 0 : index
    %14 = vector.load %arg1[%c0_13, %c0_14, %c0_15] : memref<12x32x32xf32, #tpu.memory_space<vmem>>, vector<1x32x8xf32>
    %15 = vector.shape_cast %14 : vector<1x32x8xf32> to vector<32x8xf32>
    %cst_16 = arith.constant dense<0.000000e+00> : vector<16x8xf32>
    %16 = tpu.matmul %0, %15, %cst_16 {dimension_numbers = #tpu.dot_dimension_numbers<[1], [0], [0], [1], [0, 0, 1, 1], [], []>} : vector<16x32xf32>, vector<32x8xf32>, vector<16x8xf32> -> vector<16x8xf32>
    %17 = vector.extract_strided_slice %13 {offsets = [0, 0], sizes = [8, 16], strides = [1, 1]} : vector<32x16xf32> to vector<8x16xf32>
    %cst_17 = arith.constant dense<0.000000e+00> : vector<16x16xf32>
    %18 = tpu.matmul %16, %17, %cst_17 {dimension_numbers = #tpu.dot_dimension_numbers<[1], [0], [0], [1], [0, 0, 1, 1], [], []>} : vector<16x8xf32>, vector<8x16xf32>, vector<16x16xf32> -> vector<16x16xf32>
    %19 = arith.addf %18, %10 : vector<16x16xf32>
    %c1_18 = arith.constant 1 : index
    %c0_19 = arith.constant 0 : index
    %c0_20 = arith.constant 0 : index
    %20 = vector.load %arg1[%c1_18, %c0_19, %c0_20] : memref<12x32x32xf32, #tpu.memory_space<vmem>>, vector<1x32x8xf32>
    %21 = vector.shape_cast %20 : vector<1x32x8xf32> to vector<32x8xf32>
    %cst_21 = arith.constant dense<0.000000e+00> : vector<16x8xf32>
    %22 = tpu.matmul %0, %21, %cst_21 {dimension_numbers = #tpu.dot_dimension_numbers<[1], [0], [0], [1], [0, 0, 1, 1], [], []>} : vector<16x32xf32>, vector<32x8xf32>, vector<16x8xf32> -> vector<16x8xf32>
    %23 = vector.extract_strided_slice %13 {offsets = [8, 0], sizes = [8, 16], strides = [1, 1]} : vector<32x16xf32> to vector<8x16xf32>
    %cst_22 = arith.constant dense<0.000000e+00> : vector<16x16xf32>
    %24 = tpu.matmul %22, %23, %cst_22 {dimension_numbers = #tpu.dot_dimension_numbers<[1], [0], [0], [1], [0, 0, 1, 1], [], []>} : vector<16x8xf32>, vector<8x16xf32>, vector<16x16xf32> -> vector<16x16xf32>
    %25 = arith.addf %24, %10 : vector<16x16xf32>
    %c2_23 = arith.constant 2 : index
    %c0_24 = arith.constant 0 : index
    %c0_25 = arith.constant 0 : index
    %26 = vector.load %arg1[%c2_23, %c0_24, %c0_25] : memref<12x32x32xf32, #tpu.memory_space<vmem>>, vector<1x32x8xf32>
    %27 = vector.shape_cast %26 : vector<1x32x8xf32> to vector<32x8xf32>
    %cst_26 = arith.constant dense<0.000000e+00> : vector<16x8xf32>
    %28 = tpu.matmul %0, %27, %cst_26 {dimension_numbers = #tpu.dot_dimension_numbers<[1], [0], [0], [1], [0, 0, 1, 1], [], []>} : vector<16x32xf32>, vector<32x8xf32>, vector<16x8xf32> -> vector<16x8xf32>
    %29 = vector.extract_strided_slice %13 {offsets = [16, 0], sizes = [8, 16], strides = [1, 1]} : vector<32x16xf32> to vector<8x16xf32>
    %cst_27 = arith.constant dense<0.000000e+00> : vector<16x16xf32>
    %30 = tpu.matmul %28, %29, %cst_27 {dimension_numbers = #tpu.dot_dimension_numbers<[1], [0], [0], [1], [0, 0, 1, 1], [], []>} : vector<16x8xf32>, vector<8x16xf32>, vector<16x16xf32> -> vector<16x16xf32>
    %31 = arith.addf %30, %10 : vector<16x16xf32>
    %c3 = arith.constant 3 : index
    %c0_28 = arith.constant 0 : index
    %c0_29 = arith.constant 0 : index
    %32 = vector.load %arg1[%c3, %c0_28, %c0_29] : memref<12x32x32xf32, #tpu.memory_space<vmem>>, vector<1x32x8xf32>
    %33 = vector.shape_cast %32 : vector<1x32x8xf32> to vector<32x8xf32>
    %cst_30 = arith.constant dense<0.000000e+00> : vector<16x8xf32>
    %34 = tpu.matmul %0, %33, %cst_30 {dimension_numbers = #tpu.dot_dimension_numbers<[1], [0], [0], [1], [0, 0, 1, 1], [], []>} : vector<16x32xf32>, vector<32x8xf32>, vector<16x8xf32> -> vector<16x8xf32>
    %35 = vector.extract_strided_slice %13 {offsets = [24, 0], sizes = [8, 16], strides = [1, 1]} : vector<32x16xf32> to vector<8x16xf32>
    %cst_31 = arith.constant dense<0.000000e+00> : vector<16x16xf32>
    %36 = tpu.matmul %34, %35, %cst_31 {dimension_numbers = #tpu.dot_dimension_numbers<[1], [0], [0], [1], [0, 0, 1, 1], [], []>} : vector<16x8xf32>, vector<8x16xf32>, vector<16x16xf32> -> vector<16x16xf32>
    %37 = arith.addf %36, %10 : vector<16x16xf32>
    %38 = tpu.concatenate %19, %25, %31, %37 in 0 : vector<16x16xf32>, vector<16x16xf32>, vector<16x16xf32>, vector<16x16xf32> -> vector<64x16xf32>
    %cst_32 = arith.constant dense<0xFF800000> : vector<64xf32>
    %39 = vector.multi_reduction <maximumf>, %38, %cst_32 [1] : vector<64x16xf32> to vector<64xf32>
    %40 = vector.shape_cast %39 : vector<64xf32> to vector<64x1xf32>
    %41 = vector.broadcast %40 : vector<64x1xf32> to vector<64x16xf32>
    %42 = arith.subf %38, %41 : vector<64x16xf32>
    %43 = math.exp %42 : vector<64x16xf32>
    %cst_33 = arith.constant dense<0.000000e+00> : vector<64xf32>
    %44 = vector.multi_reduction <add>, %43, %cst_33 [1] : vector<64x16xf32> to vector<64xf32>
    %45 = vector.shape_cast %44 : vector<64xf32> to vector<64x1xf32>
    %46 = tpu.reciprocal %45 : vector<64x1xf32> -> vector<64x1xf32>
    %47 = vector.broadcast %46 : vector<64x1xf32> to vector<64x16xf32>
    %48 = arith.mulf %43, %47 : vector<64x16xf32>
    %49 = vector.shape_cast %4 : vector<1x32xf32> to vector<1x32xf32>
    %50 = vector.broadcast %49 : vector<1x32xf32> to vector<16x32xf32>
    %c5 = arith.constant 5 : index
    %c0_34 = arith.constant 0 : index
    %c0_35 = arith.constant 0 : index
    %51 = vector.load %arg1[%c5, %c0_34, %c0_35] : memref<12x32x32xf32, #tpu.memory_space<vmem>>, vector<1x32x32xf32>
    %52 = vector.shape_cast %51 : vector<1x32x32xf32> to vector<32x32xf32>
    %cst_36 = arith.constant dense<0.000000e+00> : vector<16x32xf32>
    %53 = tpu.matmul %2, %52, %cst_36 {dimension_numbers = #tpu.dot_dimension_numbers<[1], [0], [0], [1], [0, 0, 1, 1], [], []>} : vector<16x32xf32>, vector<32x32xf32>, vector<16x32xf32> -> vector<16x32xf32>
    %54 = vector.extract_strided_slice %48 {offsets = [0, 0], sizes = [16, 16], strides = [1, 1]} : vector<64x16xf32> to vector<16x16xf32>
    %cst_37 = arith.constant dense<0.000000e+00> : vector<16x32xf32>
    %55 = tpu.matmul %54, %53, %cst_37 {dimension_numbers = #tpu.dot_dimension_numbers<[1], [0], [0], [1], [0, 0, 1, 1], [], []>} : vector<16x16xf32>, vector<16x32xf32>, vector<16x32xf32> -> vector<16x32xf32>
    %56 = arith.addf %50, %55 : vector<16x32xf32>
    %c6 = arith.constant 6 : index
    %c0_38 = arith.constant 0 : index
    %c0_39 = arith.constant 0 : index
    %57 = vector.load %arg1[%c6, %c0_38, %c0_39] : memref<12x32x32xf32, #tpu.memory_space<vmem>>, vector<1x32x32xf32>
    %58 = vector.shape_cast %57 : vector<1x32x32xf32> to vector<32x32xf32>
    %cst_40 = arith.constant dense<0.000000e+00> : vector<16x32xf32>
    %59 = tpu.matmul %2, %58, %cst_40 {dimension_numbers = #tpu.dot_dimension_numbers<[1], [0], [0], [1], [0, 0, 1, 1], [], []>} : vector<16x32xf32>, vector<32x32xf32>, vector<16x32xf32> -> vector<16x32xf32>
    %60 = vector.extract_strided_slice %48 {offsets = [16, 0], sizes = [16, 16], strides = [1, 1]} : vector<64x16xf32> to vector<16x16xf32>
    %cst_41 = arith.constant dense<0.000000e+00> : vector<16x32xf32>
    %61 = tpu.matmul %60, %59, %cst_41 {dimension_numbers = #tpu.dot_dimension_numbers<[1], [0], [0], [1], [0, 0, 1, 1], [], []>} : vector<16x16xf32>, vector<16x32xf32>, vector<16x32xf32> -> vector<16x32xf32>
    %62 = arith.addf %56, %61 : vector<16x32xf32>
    %c7 = arith.constant 7 : index
    %c0_42 = arith.constant 0 : index
    %c0_43 = arith.constant 0 : index
    %63 = vector.load %arg1[%c7, %c0_42, %c0_43] : memref<12x32x32xf32, #tpu.memory_space<vmem>>, vector<1x32x32xf32>
    %64 = vector.shape_cast %63 : vector<1x32x32xf32> to vector<32x32xf32>
    %cst_44 = arith.constant dense<0.000000e+00> : vector<16x32xf32>
    %65 = tpu.matmul %2, %64, %cst_44 {dimension_numbers = #tpu.dot_dimension_numbers<[1], [0], [0], [1], [0, 0, 1, 1], [], []>} : vector<16x32xf32>, vector<32x32xf32>, vector<16x32xf32> -> vector<16x32xf32>
    %66 = vector.extract_strided_slice %48 {offsets = [32, 0], sizes = [16, 16], strides = [1, 1]} : vector<64x16xf32> to vector<16x16xf32>
    %cst_45 = arith.constant dense<0.000000e+00> : vector<16x32xf32>
    %67 = tpu.matmul %66, %65, %cst_45 {dimension_numbers = #tpu.dot_dimension_numbers<[1], [0], [0], [1], [0, 0, 1, 1], [], []>} : vector<16x16xf32>, vector<16x32xf32>, vector<16x32xf32> -> vector<16x32xf32>
    %68 = arith.addf %62, %67 : vector<16x32xf32>
    %c8_46 = arith.constant 8 : index
    %c0_47 = arith.constant 0 : index
    %c0_48 = arith.constant 0 : index
    %69 = vector.load %arg1[%c8_46, %c0_47, %c0_48] : memref<12x32x32xf32, #tpu.memory_space<vmem>>, vector<1x32x32xf32>
    %70 = vector.shape_cast %69 : vector<1x32x32xf32> to vector<32x32xf32>
    %cst_49 = arith.constant dense<0.000000e+00> : vector<16x32xf32>
    %71 = tpu.matmul %2, %70, %cst_49 {dimension_numbers = #tpu.dot_dimension_numbers<[1], [0], [0], [1], [0, 0, 1, 1], [], []>} : vector<16x32xf32>, vector<32x32xf32>, vector<16x32xf32> -> vector<16x32xf32>
    %72 = vector.extract_strided_slice %48 {offsets = [48, 0], sizes = [16, 16], strides = [1, 1]} : vector<64x16xf32> to vector<16x16xf32>
    %cst_50 = arith.constant dense<0.000000e+00> : vector<16x32xf32>
    %73 = tpu.matmul %72, %71, %cst_50 {dimension_numbers = #tpu.dot_dimension_numbers<[1], [0], [0], [1], [0, 0, 1, 1], [], []>} : vector<16x16xf32>, vector<16x32xf32>, vector<16x32xf32> -> vector<16x32xf32>
    %74 = arith.addf %68, %73 : vector<16x32xf32>
    %c9 = arith.constant 9 : index
    %c0_51 = arith.constant 0 : index
    %c0_52 = arith.constant 0 : index
    %75 = vector.load %arg1[%c9, %c0_51, %c0_52] : memref<12x32x32xf32, #tpu.memory_space<vmem>>, vector<1x32x32xf32>
    %76 = vector.shape_cast %75 : vector<1x32x32xf32> to vector<32x32xf32>
    %cst_53 = arith.constant dense<0.000000e+00> : vector<16x32xf32>
    %77 = tpu.matmul %74, %76, %cst_53 {dimension_numbers = #tpu.dot_dimension_numbers<[1], [0], [0], [1], [0, 0, 1, 1], [], []>} : vector<16x32xf32>, vector<32x32xf32>, vector<16x32xf32> -> vector<16x32xf32>
    %78 = vector.broadcast %6 : vector<1x32xf32> to vector<16x32xf32>
    %79 = arith.addf %77, %78 : vector<16x32xf32>
    %cst_54 = arith.constant 5.000000e-01 : f32
    %80 = vector.broadcast %cst_54 : f32 to vector<16x32xf32>
    %81 = arith.mulf %80, %79 : vector<16x32xf32>
    %cst_55 = arith.constant 0.707106769 : f32
    %82 = vector.broadcast %cst_55 : f32 to vector<16x32xf32>
    %83 = arith.mulf %79, %82 : vector<16x32xf32>
    %84 = math.erf %83 : vector<16x32xf32>
    %cst_56 = arith.constant 1.000000e+00 : f32
    %85 = vector.broadcast %cst_56 : f32 to vector<16x32xf32>
    %86 = arith.addf %85, %84 : vector<16x32xf32>
    %87 = arith.mulf %81, %86 : vector<16x32xf32>
    %c10 = arith.constant 10 : index
    %c0_57 = arith.constant 0 : index
    %c0_58 = arith.constant 0 : index
    %88 = vector.load %arg1[%c10, %c0_57, %c0_58] : memref<12x32x32xf32, #tpu.memory_space<vmem>>, vector<1x32x32xf32>
    %89 = vector.shape_cast %88 : vector<1x32x32xf32> to vector<32x32xf32>
    %cst_59 = arith.constant dense<0.000000e+00> : vector<16x32xf32>
    %90 = tpu.matmul %87, %89, %cst_59 {dimension_numbers = #tpu.dot_dimension_numbers<[1], [0], [0], [1], [0, 0, 1, 1], [], []>} : vector<16x32xf32>, vector<32x32xf32>, vector<16x32xf32> -> vector<16x32xf32>
    %91 = vector.broadcast %8 : vector<1x32xf32> to vector<16x32xf32>
    %92 = arith.addf %90, %91 : vector<16x32xf32>
    %93 = arith.addf %92, %74 : vector<16x32xf32>
    %c0_60 = arith.constant 0 : index
    %c0_61 = arith.constant 0 : index
    %94 = vector.load %arg2[%c0_60, %c0_61] : memref<16x32xf32, #tpu.memory_space<vmem>>, vector<16x32xf32>
    tpu.vector_store %arg2[%c0_60, %c0_61], %93 {strides = array<i32>} : memref<16x32xf32, #tpu.memory_space<vmem>>, vector<16x32xf32>,
    return
  }
}

</mosaic_0001>

<bundles_post_ra>
// kernel: tpu_custom_call.1
= control target key start
LH: loop header
LB: loop body
LE: loop exit
PB: predicated region body
PF: predicated region fallthrough
CT: control target
= control target key end

     0   :  { %7 = vsyncpa [#allocation3], 0  ;;  %s2459_s0 = inlined_call_operand.vmem [shape: f32[64,32], index: 0, kind: input, shape index: {}]   ;;  %s2460_s1 = inlined_call_operand.hbm [shape: f32[12,32,32], index: 1, kind: input, shape index: {}]   ;;  %s2461_s2 = inlined_call_operand.hbm [shape: f32[16,32], index: 2, kind: output, shape index: {}]  }
   0x1   :  { %8 = vsyncpa [#allocation4], 0  ;;  %s2266_s9 = smov [#allocation2]   ;;  %s2218_s13 = scalar_lea.hbm %s2460_s1, 6144 }
   0x2   :  { %s16_s10 = sshll.u32 %s2266_s9, 4  ;;  %p2219_p0 = scmp.ne.s32.totalorder %s2460_s1, %s2218_s13  ;;  %s17_s10 = int_to_ptr.vmem [resolvable:$true] %s16_s10 }
   0x3   :  { %p2222_p1 = scmp.lt.u32.totalorder %s2218_s13, %s2460_s1 }
   0x5   :  { %p2224_p2 = pnand %p2222_p1, %p2219_p0 }
   0x7   :  { %2227 = shalt.err (!%p2224_p2)
}
   0x8   :  { %s2228_s18 = scalar_lea.vmem %s17_s10, 6144  ;;  %p2233_p4 = scmp.lt.s32.totalorder %s17_s10, %s17_s10 }
   0x9   :  { %p2229_p3 = scmp.ne.s32.totalorder %s17_s10, %s2228_s18  ;;  %p2234_p5 = scmp.lt.s32.totalorder %s2228_s18, %s2228_s18 }
   0xb   :  { %p2235_p6 = por %p2234_p5, %p2233_p4 }
   0xd   :  { %p2236_p7 = pnand %p2235_p6, %p2229_p3 }
   0xf   :  { %2239 = shalt.err (!%p2236_p7)
}
  0x10   :  { %s2267_s19 = smov 128   ;;  %s2268_s20 = smov 8  }
  0x11   :  { %22 = dma.hbm_to_vmem [thread:$0]  %s2460_s1, 6144, %s17_s10, [#allocation3], %s2267_s19, %s2267_s19, %s2268_s20  }
  0x12   :  { %2262 = dma.done.wait [#allocation3], 6144  }
  0x13   :  { %2263 = vsyncadd [#allocation3], 4294961152  ;;  %v28_v0 = vld [vmem:[%s2459_s0 + $0x10] sm:$0xff]  ;;  %v29_v1 = vld [vmem:[%s2459_s0 + $0x18] sm:$0xff]  ;;  %vm45_vm0 = vcmask 261120   ;;  %vm228_vm1 = vcmask 64512  }
  0x14   :  { %v143_v2 = vld [vmem:[#allocation2] sm:$0xff]  ;;  %v2066_v3 = vpack.c.bf16 %v29_v1, %v28_v0  ;;  %v144_v4 = vld [vmem:[#allocation2 + $0x8] sm:$0xff]  ;;  %v145_v9 = vld [vmem:[#allocation2 + $0x10] sm:$0xff]  ;;  %vm793_vm2 = vcmask 130048  }
  0x15   :  { %v30_v5 = vld [vmem:[%s2459_s0 + $0x20] sm:$0xff]  ;;  %v31_v6 = vld [vmem:[%s2459_s0 + $0x28] sm:$0xff]  ;;  %v2074_v7 = vpack.c.bf16 %v144_v4, %v143_v2  ;;  %v146_v10 = vld [vmem:[#allocation2 + $0x18] sm:$0xff] }
  0x16   :  { %v2070_v8 = vpack.c.bf16 %v31_v6, %v30_v5  ;;  %v41_v11 = vld [vmem:[#allocation2 + $0x80] sm:$0xff]  ;;  %2067 = vmatprep.subr.bf16.mxu0 %v2066_v3  ;;  %v2078_v12 = vpack.c.bf16 %v146_v10, %v145_v9  ;;  %v312_v15 = vld [vmem:[#allocation2 + $0x28] sm:$0xff]  ;;  %v313_v17 = vld [vmem:[#allocation2 + $0x30] sm:$0xff] }
  0x17   :  { %1902 = vmatprep.mubr.msk.f32.mxu0 %vm45_vm0, %v41_v11  ;;  %v2316_v13 = vld [vmem:[%s2459_s0] sm:$0xff]  ;;  %2069 = vmatpush3.bf16.msra.mxu0 %v2066_v3  ;;  %v314_v18 = vld [vmem:[#allocation2 + $0x38] sm:$0xff]  ;;  %v42_v19 = vld [vmem:[#allocation2 + $0x88] sm:$0xff] }
  0x18   :  { %v311_v14 = vld [vmem:[#allocation2 + $0x20] sm:$0xff]  ;;  %2075 = vmatprep.subr.bf16.mxu1 %v2074_v7  ;;  %2071 = vmatprep.subr.bf16.mxu0 %v2070_v8  ;;  %v27_v20 = vld [vmem:[%s2459_s0 + $0x8] sm:$0xff]  ;;  %v2086_v21 = vpack.c.bf16 %v314_v18, %v313_v17  ;;  %v43_v22 = vld [vmem:[#allocation2 + $0x90] sm:$0xff] }
  0x19   :  { %2077 = vmatpush3.bf16.msra.mxu1 %v2074_v7  ;;  %v2082_v16 = vpack.c.bf16 %v312_v15, %v311_v14  ;;  %1916 = vmatprep.mubr.msk.f32.mxu1 %vm45_vm0, %v2316_v13  ;;  %v472_v23 = vld [vmem:[#allocation2 + $0x40] sm:$0xff]  ;;  %v473_v24 = vld [vmem:[#allocation2 + $0x48] sm:$0xff]  ;;  %v44_v25 = vld [vmem:[#allocation2 + $0x98] sm:$0xff] }
  0x1a   :  { %2079 = vmatprep.subr.bf16.mxu1 %v2078_v12  ;;  %v2090_v26 = vpack.c.bf16 %v473_v24, %v472_v23  ;;  %v474_v27 = vld [vmem:[#allocation2 + $0x50] sm:$0xff]  ;;  %v475_v28 = vld [vmem:[#allocation2 + $0x58] sm:$0xff]  ;;  %v633_v36 = vld [vmem:[#allocation2 + $0x60] sm:$0xff] }
  0x1b   :  { %2073 = vmatpush3.bf16.msra.mxu0 %v2070_v8  ;;  %v2094_v29 = vpack.c.bf16 %v475_v28, %v474_v27  ;;  %v634_v37 = vld [vmem:[#allocation2 + $0x68] sm:$0xff]  ;;  %v635_v41 = vld [vmem:[#allocation2 + $0x70] sm:$0xff]  ;;  %v636_v42 = vld [vmem:[#allocation2 + $0x78] sm:$0xff] }
  0x1c   :  { %2083 = vmatprep.subr.bf16.mxu0 %v2082_v16  ;;  %v2098_v40 = vpack.c.bf16 %v634_v37, %v633_v36  ;;  %v2102_v45 = vpack.c.bf16 %v636_v42, %v635_v41  ;;  %v887_v46 = vld [vmem:[#allocation2 + $0xa0] sm:$0xff]  ;;  %v888_v47 = vld [vmem:[#allocation2 + $0xa8] sm:$0xff]  ;;  %v2344_v51 = vld [vmem:[#allocation2 + $0x170] sm:$0xff] }
  0x1d   :  { %2081 = vmatpush3.bf16.msra.mxu1 %v2078_v12  ;;  %v2106_v48 = vpack.c.bf16 %v888_v47, %v887_v46  ;;  %v2342_v49 = vld [vmem:[#allocation2 + $0x168] sm:$0xff]  ;;  %v889_v1 = vld [vmem:[#allocation2 + $0xb0] sm:$0xff]  ;;  %v890_v2 = vld [vmem:[#allocation2 + $0xb8] sm:$0xff] }
  0x1e   :  { %1903 = vmatmul.mubr.msk.f32.vlgmr.msra.gmra.mrb[0].mxu0 %vm45_vm0, %v42_v19  ;;  %v2110_v5 = vpack.c.bf16 %v890_v2, %v889_v1  ;;  %v2363_v6 = vld [vmem:[%s2459_s0 + $0x30] sm:$0xff]  ;;  %v2372_v7 = vld [vmem:[%s2459_s0 + $0x38] sm:$0xff]  ;;  %v1220_v23 = vld [vmem:[#allocation2 + $0xe8] sm:$0xff]  ;;  %s2269_s0 = smov [#allocation5]  }
  0x1f   :  { %2085 = vmatpush3.bf16.msra.mxu0 %v2082_v16  ;;  %1905 = vmatprep.mubr.msk.f32.mxu0 %vm45_vm0, %v43_v22  ;;  %v1219_v22 = vld [vmem:[#allocation2 + $0xe0] sm:$0xff]  ;;  %v1058_v1 = vld [vmem:[#allocation2 + $0xd0] sm:$0xff]  ;;  %v1059_v2 = vld [vmem:[#allocation2 + $0xd8] sm:$0xff]  ;;  %s1743_s10 = sshll.u32 %s2269_s0, 4  ;;  %s1744_s10 = int_to_ptr.vmem [resolvable:$true] %s1743_s10 }
  0x20   :  { %1917 = vmatmul.mubr.msk.f32.vlgmr.msra.gmra.mrb[0].mxu1 %vm45_vm0, %v27_v20  ;;  %2087 = vmatprep.subr.bf16.mxu0 %v2086_v21  ;;  %v2130_v24 = vpack.c.bf16 %v1220_v23, %v1219_v22  ;;  %v1382_v28 = vld [vmem:[#allocation2 + $0x100] sm:$0xff]  ;;  %s2240_s11 = scalar_lea.vmem %s1744_s10, 256  ;;  %p2245_p9 = scmp.lt.s32.totalorder %s1744_s10, %s1744_s10 }
  0x21   :  { %v1056_v47 = vld [vmem:[#allocation2 + $0xc0] sm:$0xff]  ;;  %p2241_p8 = scmp.ne.s32.totalorder %s1744_s10, %s2240_s11  ;;  %p2246_p10 = scmp.lt.s32.totalorder %s2240_s11, %s2240_s11 }
  0x22   :  { %1906 = vmatmul.mubr.msk.f32.gmra.mrb[2].mxu0 %vm45_vm0, %v44_v25  ;;  %v1221_v25 = vld [vmem:[#allocation2 + $0xf0] sm:$0xff] }
  0x23   :  { %2089 = vmatpush3.bf16.msra.mxu0 %v2086_v21  ;;  %1932 = vmatprep.mubr.msk.f32.mxu0 %vm45_vm0, %v2316_v13  ;;  %p2247_p11 = por %p2246_p10, %p2245_p9 }
  0x24   :  { %2091 = vmatprep.subr.bf16.mxu0 %v2090_v26 }
  0x25   :  { %p2248_p12 = pnand %p2247_p11, %p2241_p8 }
  0x26   :  { %1933 = vmatmul.mubr.msk.f32.vlgmr.msra.gmra.mrb[4].mxu0 %vm45_vm0, %v27_v20 }
  0x27   :  { %2093 = vmatpush3.bf16.msra.mxu0 %v2090_v26  ;;  %1948 = vmatprep.mubr.msk.f32.mxu0 %vm45_vm0, %v2316_v13  ;;  %v1222_v26 = vld [vmem:[#allocation2 + $0xf8] sm:$0xff] }
  0x28   :  { %2095 = vmatprep.subr.bf16.mxu0 %v2094_v29  ;;  %v2134_v27 = vpack.c.bf16 %v1222_v26, %v1221_v25 }
  0x2b   :  { %2097 = vmatpush3.bf16.msra.mxu0 %v2094_v29  ;;  %v1383_v29 = vld [vmem:[#allocation2 + $0x108] sm:$0xff] }
  0x2e   :  { %1949 = vmatmul.mubr.msk.f32.vlgmr.msra.gmra.mrb[6].mxu0 %vm45_vm0, %v27_v20 }
  0xf1   :  { %v1904_v30 = vpop.f32.mrb[0].mxu0 }
  0xf2   :  { %v124_v31 = vpop.f32.mrb[1].mxu0 }
  0xf3   :  { %v1918_v32 = vpop.f32.mrb[0].mxu1  ;;  %1919 = vmatprep.subr.mxu1 %v124_v31 }
  0xf4   :  { %v219_v33 = vpop.f32.mrb[1].mxu1  ;;  %1920 = vmatpush3.msra.mxu1 %v124_v31  ;;  %v1384_v31 = vld [vmem:[#allocation2 + $0x110] sm:$0xff] }
  0xf5   :  { %1921 = vmatprep.mubr.msk.f32.mxu1 %vm228_vm1, %v219_v33  ;;  %1935 = vmatprep.subr.mxu1 %v1904_v30  ;;  %v1907_v34 = vpop.f32.mrb[2].mxu0 }
  0xf6   :  { %1922 = vmatmul.mubr.msk.f32.vlgmr.msra.gmra.mrb[2].mxu1 %vm228_vm1, %v1918_v32  ;;  %v134_v35 = vpop.f32.mrb[3].mxu0  ;;  %1967 = vmatprep.subr.mxu0 %v1907_v34  ;;  %v1385_v32 = vld [vmem:[#allocation2 + $0x118] sm:$0xff] }
  0xf7   :  { %1936 = vmatpush3.msra.mxu1 %v1904_v30  ;;  %1968 = vmatpush3.msra.mxu0 %v1907_v34  ;;  %v2142_v30 = vpack.c.bf16 %v1383_v29, %v1382_v28  ;;  %v2146_v33 = vpack.c.bf16 %v1385_v32, %v1384_v31  ;;  %v1546_v31 = vld [vmem:[#allocation2 + $0x128] sm:$0xff] }
  0xf8   :  { %1951 = vmatprep.subr.mxu1 %v134_v35  ;;  %2107 = vmatprep.subr.bf16.mxu0 %v2106_v48 }
  0xf9   :  { %v1934_v38 = vpop.f32.mrb[4].mxu0 }
  0xfa   :  { %v381_v39 = vpop.f32.mrb[5].mxu0 }
  0xfb   :  { %1937 = vmatprep.mubr.msk.f32.mxu1 %vm228_vm1, %v381_v39 }
  0xfc   :  { %1938 = vmatmul.mubr.msk.f32.vlgmr.msra.gmra.mrb[4].mxu1 %vm228_vm1, %v1934_v38 }
  0xfd   :  { %1952 = vmatpush3.msra.mxu1 %v134_v35 }
  0xfe   :  { %2099 = vmatprep.subr.bf16.mxu1 %v2098_v40 }
 0x101   :  { %v1950_v43 = vpop.f32.mrb[6].mxu0 }
 0x102   :  { %v542_v44 = vpop.f32.mrb[7].mxu0 }
 0x103   :  { %1953 = vmatprep.mubr.msk.f32.mxu1 %vm228_vm1, %v542_v44 }
 0x104   :  { %1954 = vmatmul.mubr.msk.f32.vlgmr.msra.gmra.mrb[6].mxu1 %vm228_vm1, %v1950_v43 }
 0x105   :  { %2101 = vmatpush3.bf16.msra.mxu1 %v2098_v40  ;;  %1964 = vmatprep.mubr.msk.f32.mxu1 %vm45_vm0, %v2316_v13 }
 0x106   :  { %2103 = vmatprep.subr.bf16.mxu1 %v2102_v45 }
 0x109   :  { %2105 = vmatpush3.bf16.msra.mxu1 %v2102_v45 }
 0x10c   :  { %1965 = vmatmul.mubr.msk.f32.vlgmr.msra.gmra.mrb[8].mxu1 %vm45_vm0, %v27_v20 }
 0x1c9   :  { %v1923_v50 = vpop.f32.mrb[2].mxu1 }
 0x1ca   :  { %v301_v52 = vpop.f32.mrb[3].mxu1  ;;  %v307_v54 = vadd.f32 %v1923_v50, %v2344_v51 }
 0x1cb   :  { %v302_v53 = vadd.f32 %v301_v52, %v2342_v49 }
 0x1cc   :  { %v797_v58 = vsel %vm793_vm2, %v307_v54, -inf }
 0x1cd   :  { %v794_v55 = vsel %vm793_vm2, %v302_v53, -inf }
 0x1ce   :  { %795 = vmax.xlane.f32.xlu0 %v794_v55 }
 0x1cf   :  { %v1939_v56 = vpop.f32.mrb[4].mxu1 }
 0x1d0   :  { %v462_v57 = vpop.f32.mrb[5].mxu1  ;;  %v2385_v17 = vadd.f32 %v1939_v56, %v2344_v51 }
 0x1d1   :  { %v2351_v59 = vadd.f32 %v462_v57, %v2342_v49 }
 0x1d2   :  { %798 = vmax.xlane.f32.xlu0 %v797_v58  ;;  %v803_v20 = vsel %vm793_vm2, %v2385_v17, -inf }
 0x1d3   :  { %v800_v60 = vsel %vm793_vm2, %v2351_v59, -inf }
 0x1d6   :  { %801 = vmax.xlane.f32.xlu0 %v800_v60 }
 0x1d7   :  { %v1955_v61 = vpop.f32.mrb[6].mxu1 }
 0x1d8   :  { %v623_v62 = vpop.f32.mrb[7].mxu1  ;;  %v2390_v19 = vadd.f32 %v1955_v61, %v2344_v51 }
 0x1d9   :  { %v2356_v63 = vadd.f32 %v623_v62, %v2342_v49 }
 0x1da   :  { %v809_v21 = vsel %vm793_vm2, %v2390_v19, -inf }
 0x1db   :  { %v806_v0 = vsel %vm793_vm2, %v2356_v63, -inf }
 0x1dc   :  { %807 = vmax.xlane.f32.xlu0 %v806_v0 }
 0x1df   :  { %v1966_v3 = vpop.f32.mrb[8].mxu1 }
 0x1e0   :  { %v703_v4 = vpop.f32.mrb[9].mxu1 }
 0x1e1   :  { %1969 = vmatprep.mubr.msk.f32.mxu0 %vm228_vm1, %v703_v4 }
 0x1e2   :  { %1970 = vmatmul.mubr.msk.f32.vlgmr.msra.gmra.mrb[8].mxu0 %vm228_vm1, %v1966_v3 }
 0x1e3   :  { %2109 = vmatpush3.bf16.msra.mxu0 %v2106_v48  ;;  %1980 = vmatprep.mubr.msk.f32.mxu0 %vm45_vm0, %v2363_v6  ;;  %v1057_v48 = vld [vmem:[#allocation2 + $0xc8] sm:$0xff] }
 0x1e4   :  { %2111 = vmatprep.subr.bf16.mxu0 %v2110_v5 }
 0x1e7   :  { %2113 = vmatpush3.bf16.msra.mxu0 %v2110_v5 }
 0x1e8   :  { %2131 = vmatprep.subr.bf16.mxu0 %v2130_v24 }
 0x1ea   :  { %1981 = vmatmul.mubr.msk.f32.vlgmr.msra.gmra.mrb[10].mxu0 %vm45_vm0, %v2372_v7 }
 0x1eb   :  { %2016 = vmatprep.mubr.msk.f32.mxu0 %vm45_vm0, %v2363_v6  ;;  %2133 = vmatpush3.bf16.msra.mxu0 %v2130_v24 }
 0x1ec   :  { %2135 = vmatprep.subr.bf16.mxu0 %v2134_v27 }
 0x1ef   :  { %2137 = vmatpush3.bf16.msra.mxu0 %v2134_v27 }
 0x1f0   :  { %2143 = vmatprep.subr.bf16.mxu0 %v2142_v30 }
 0x1f2   :  { %2017 = vmatmul.mubr.msk.f32.vlgmr.msra.gmra.mrb[12].mxu0 %vm45_vm0, %v2372_v7 }
 0x1f3   :  { %2145 = vmatpush3.bf16.msra.mxu0 %v2142_v30  ;;  %2034 = vmatprep.mubr.msk.f32.mxu0 %vm45_vm0, %v2363_v6  ;;  %v1545_v30 = vld [vmem:[#allocation2 + $0x120] sm:$0xff] }
 0x1f4   :  { %2147 = vmatprep.subr.bf16.mxu0 %v2146_v33  ;;  %v2154_v32 = vpack.c.bf16 %v1546_v31, %v1545_v30 }
 0x1f7   :  { %2149 = vmatpush3.bf16.msra.mxu0 %v2146_v33 }
 0x1f8   :  { %2155 = vmatprep.subr.bf16.mxu0 %v2154_v32 }
 0x1fa   :  { %2035 = vmatmul.mubr.msk.f32.vlgmr.msra.gmra.mrb[14].mxu0 %vm45_vm0, %v2372_v7 }
 0x1fb   :  { %2157 = vmatpush3.bf16.msra.mxu0 %v2154_v32 }
 0x25b   :  { %v796_v8 = vpop.xlane.xlu0 %795 }
 0x25c   :  { %v818_v9 = vsub.f32 %v302_v53, %v796_v8  ;;  %v2122_v8 = vpack.c.bf16 %v1059_v2, %v1058_v1  ;;  %v1792_v1 = vld [vmem:[#allocation2 + $0x161] ss:$0 sm:$0xff] }
 0x25e   :  { %v826_v10 = vmul.f32 1.442695, %v818_v9 }
 0x25f   :  { %v799_v11 = vpop.xlane.xlu0 %798 }
 0x260   :  { %2182 = vpow2.f32 %v826_v10  ;;  %v819_v12 = vsub.f32 %v307_v54, %v799_v11 }
 0x262   :  { %v828_v13 = vmul.f32 1.442695, %v819_v12 }
 0x263   :  { %v802_v34 = vpop.xlane.xlu0 %801 }
 0x264   :  { %2184 = vpow2.f32 %v828_v13  ;;  %v820_v35 = vsub.f32 %v2351_v59, %v802_v34 }
 0x266   :  { %v830_v37 = vmul.f32 1.442695, %v820_v35 }
 0x268   :  { %2186 = vpow2.f32 %v830_v37 }
 0x269   :  { %v808_v36 = vpop.xlane.xlu0 %807 }
 0x26a   :  { %v2378_v14 = vpop.eup %2182  ;;  %v822_v38 = vsub.f32 %v2356_v63, %v808_v36 }
 0x26b   :  { %v842_v15 = vsel %vm793_vm2, %v2378_v14, 0.0 }
 0x26c   :  { %843 = vadd.xlane.f32.xlu1 %v842_v15  ;;  %v834_v39 = vmul.f32 1.442695, %v822_v38 }
 0x26e   :  { %v2382_v16 = vpop.eup %2184  ;;  %2188 = vpow2.f32 %v834_v39 }
 0x26f   :  { %v845_v18 = vsel %vm793_vm2, %v2382_v16, 0.0 }
 0x270   :  { %846 = vadd.xlane.f32.xlu1 %v845_v18 }
 0x272   :  { %v2408_v46 = vpop.eup %2186 }
 0x273   :  { %v848_v50 = vsel %vm793_vm2, %v2408_v46, 0.0 }
 0x274   :  { %804 = vmax.xlane.f32.xlu1 %v803_v20 }
 0x278   :  { %810 = vmax.xlane.f32.xlu1 %v809_v21  ;;  %v2412_v53 = vpop.eup %2188 }
 0x279   :  { %v854_v55 = vsel %vm793_vm2, %v2412_v53, 0.0 }
 0x2b5   :  { %v1971_v40 = vpop.f32.mrb[8].mxu0 }
 0x2b6   :  { %v790_v41 = vadd.f32 %v1971_v40, %v2344_v51  ;;  %v784_v42 = vpop.f32.mrb[9].mxu0 }
 0x2b7   :  { %v785_v43 = vadd.f32 %v784_v42, %v2342_v49  ;;  %v2118_v49 = vpack.c.bf16 %v1057_v48, %v1056_v47 }
 0x2b8   :  { %v815_v44 = vsel %vm793_vm2, %v790_v41, -inf }
 0x2b9   :  { %816 = vmax.xlane.f32.xlu1 %v815_v44  ;;  %v812_v45 = vsel %vm793_vm2, %v785_v43, -inf }
 0x2ba   :  { %813 = vmax.xlane.f32.xlu0 %v812_v45 }
 0x2bd   :  { %v1982_v52 = vpop.f32.mrb[10].mxu0 }
 0x2be   :  { %849 = vadd.xlane.f32.xlu0 %v848_v50  ;;  %v963_v51 = vpop.f32.mrb[11].mxu0 }
 0x2bf   :  { %v2114_v54 = vpack.c.bf16 %v1982_v52, %v963_v51  ;;  %v1548_v51 = vld [vmem:[#allocation2 + $0x138] sm:$0xff] }
 0x2c1   :  { %2115 = vmatprep.subr.bf16.mxu1 %v2114_v54 }
 0x2c2   :  { %855 = vadd.xlane.f32.xlu0 %v854_v55  ;;  %2117 = vmatpush3.bf16.msra.mxu1 %v2114_v54 }
 0x2c3   :  { %2119 = vmatprep.subr.bf16.mxu1 %v2118_v49 }
 0x2c5   :  { %v2018_v24 = vpop.f32.mrb[12].mxu0 }
 0x2c6   :  { %v1289_v25 = vpop.f32.mrb[13].mxu0 }
 0x2c7   :  { %v2138_v26 = vpack.c.bf16 %v2018_v24, %v1289_v25 }
 0x2cd   :  { %v2036_v27 = vpop.f32.mrb[14].mxu0 }
 0x2ce   :  { %v1452_v28 = vpop.f32.mrb[15].mxu0 }
 0x2cf   :  { %v2150_v29 = vpack.c.bf16 %v2036_v27, %v1452_v28 }
 0x2f9   :  { %v844_v56 = vpop.xlane.xlu1 %843 }
 0x2fa   :  { %2190 = vrcp.f32 %v844_v56 }
 0x2fd   :  { %v847_v57 = vpop.xlane.xlu1 %846 }
 0x2fe   :  { %2192 = vrcp.f32 %v847_v57 }
 0x301   :  { %v805_v58 = vpop.xlane.xlu1 %804 }
 0x302   :  { %v821_v59 = vsub.f32 %v2385_v17, %v805_v58 }
 0x304   :  { %v2191_v60 = vpop.eup %2190  ;;  %v832_v61 = vmul.f32 1.442695, %v821_v59  ;;  %v1645_v59 = vld [vmem:[#allocation2 + $0x140] sm:$0xff] }
 0x305   :  { %v811_v62 = vpop.xlane.xlu1 %810  ;;  %v874_v63 = vmul.f32 %v2191_v60, %v2378_v14  ;;  %v1646_v60 = vld [vmem:[#allocation2 + $0x148] sm:$0xff] }
 0x306   :  { %2194 = vpow2.f32 %v832_v61  ;;  %v823_v0 = vsub.f32 %v2390_v19, %v811_v62  ;;  %v2162_v61 = vpack.c.bf16 %v1646_v60, %v1645_v59  ;;  %v1647_v62 = vld [vmem:[#allocation2 + $0x150] sm:$0xff] }
 0x307   :  { %1987 = vmatprep.mubr.msk.f32.mxu1 %vm793_vm2, %v874_v63  ;;  %v1648_v63 = vld [vmem:[#allocation2 + $0x158] sm:$0xff] }
 0x308   :  { %v2193_v3 = vpop.eup %2192  ;;  %v836_v4 = vmul.f32 1.442695, %v823_v0  ;;  %v2166_v0 = vpack.c.bf16 %v1648_v63, %v1647_v62 }
 0x309   :  { %v875_v5 = vmul.f32 %v2193_v3, %v2382_v16 }
 0x30a   :  { %2196 = vpow2.f32 %v836_v4 }
 0x30b   :  { %1988 = vmatmul.mubr.msk.f32.vlgmr.msra.gmra.mrb[10].mxu1 %vm793_vm2, %v875_v5 }
 0x30c   :  { %2121 = vmatpush3.bf16.msra.mxu1 %v2118_v49  ;;  %1998 = vmatprep.mubr.msk.f32.mxu1 %vm45_vm0, %v2363_v6  ;;  %v1775_v49 = vld [vmem:[#allocation2 + $0x160] ss:$0 sm:$0xff] }
 0x30d   :  { %2123 = vmatprep.subr.bf16.mxu1 %v2122_v8 }
 0x310   :  { %v2195_v9 = vpop.eup %2194  ;;  %2125 = vmatpush3.bf16.msra.mxu1 %v2122_v8 }
 0x311   :  { %v851_v10 = vsel %vm793_vm2, %v2195_v9, 0.0 }
 0x312   :  { %852 = vadd.xlane.f32.xlu1 %v851_v10 }
 0x313   :  { %1999 = vmatmul.mubr.msk.f32.vlgmr.msra.gmra.mrb[12].mxu1 %vm45_vm0, %v2372_v7 }
 0x314   :  { %v2197_v11 = vpop.eup %2196 }
 0x315   :  { %v857_v12 = vsel %vm793_vm2, %v2197_v11, 0.0 }
 0x316   :  { %858 = vadd.xlane.f32.xlu1 %v857_v12 }
 0x346   :  { %v817_v13 = vpop.xlane.xlu1 %816 }
 0x347   :  { %v825_v14 = vsub.f32 %v790_v41, %v817_v13  ;;  %v814_v15 = vpop.xlane.xlu0 %813 }
 0x348   :  { %v824_v16 = vsub.f32 %v785_v43, %v814_v15 }
 0x349   :  { %v840_v17 = vmul.f32 1.442695, %v825_v14 }
 0x34a   :  { %v838_v18 = vmul.f32 1.442695, %v824_v16 }
 0x34b   :  { %2198 = vpow2.f32 %v840_v17  ;;  %v850_v6 = vpop.xlane.xlu0 %849 }
 0x34c   :  { %2200 = vpow2.f32 %v838_v18  ;;  %v1795_v18 = vld [vmem:[#allocation2 + $0x162] ss:$0 sm:$0xff] }
 0x34d   :  { %2202 = vrcp.f32 %v850_v6 }
 0x34f   :  { %v856_v34 = vpop.xlane.xlu0 %855 }
 0x355   :  { %v2199_v19 = vpop.eup %2198 }
 0x356   :  { %v2201_v20 = vpop.eup %2200  ;;  %v863_v21 = vsel %vm793_vm2, %v2199_v19, 0.0 }
 0x357   :  { %v2203_v22 = vpop.eup %2202  ;;  %864 = vadd.xlane.f32.xlu1 %v863_v21  ;;  %v860_v7 = vsel %vm793_vm2, %v2201_v20, 0.0 }
 0x358   :  { %861 = vadd.xlane.f32.xlu0 %v860_v7  ;;  %v876_v23 = vmul.f32 %v2203_v22, %v2408_v46 }
 0x35a   :  { %2005 = vmatprep.mubr.msk.f32.mxu1 %vm793_vm2, %v876_v23 }
 0x39f   :  { %v853_v33 = vpop.xlane.xlu1 %852 }
 0x3a0   :  { %2204 = vrcp.f32 %v853_v33 }
 0x3a1   :  { %2206 = vrcp.f32 %v856_v34 }
 0x3a3   :  { %v859_v35 = vpop.xlane.xlu1 %858 }
 0x3a4   :  { %2208 = vrcp.f32 %v859_v35 }
 0x3aa   :  { %v2205_v40 = vpop.eup %2204 }
 0x3ab   :  { %v2207_v41 = vpop.eup %2206  ;;  %v877_v42 = vmul.f32 %v2205_v40, %v2195_v9 }
 0x3ac   :  { %v878_v44 = vmul.f32 %v2207_v41, %v2412_v53  ;;  %v1547_v53 = vld [vmem:[#allocation2 + $0x130] sm:$0xff] }
 0x3ad   :  { %v2158_v54 = vpack.c.bf16 %v1548_v51, %v1547_v53 }
 0x3ae   :  { %v2209_v45 = vpop.eup %2208 }
 0x3af   :  { %v879_v47 = vmul.f32 %v2209_v45, %v2197_v11  ;;  %2159 = vmatprep.subr.bf16.mxu0 %v2158_v54 }
 0x3b0   :  { %2161 = vmatpush3.bf16.msra.mxu0 %v2158_v54 }
 0x3e4   :  { %v865_v43 = vpop.xlane.xlu1 %864 }
 0x3e5   :  { %v862_v37 = vpop.xlane.xlu0 %861 }
 0x3e6   :  { %v2000_v36 = vpop.f32.mrb[12].mxu1  ;;  %2210 = vrcp.f32 %v862_v37 }
 0x3e7   :  { %v1126_v38 = vpop.f32.mrb[13].mxu1  ;;  %2212 = vrcp.f32 %v865_v43 }
 0x3e8   :  { %v2126_v39 = vpack.c.bf16 %v2000_v36, %v1126_v38 }
 0x3ea   :  { %2127 = vmatprep.subr.bf16.mxu1 %v2126_v39 }
 0x3eb   :  { %2129 = vmatpush3.bf16.msra.mxu1 %v2126_v39 }
 0x3ec   :  { %2139 = vmatprep.subr.bf16.mxu1 %v2138_v26 }
 0x3ee   :  { %2006 = vmatmul.mubr.msk.f32.vlgmr.msra.gmra.mrb[10].mxu1 %vm793_vm2, %v877_v42 }
 0x3ef   :  { %2141 = vmatpush3.bf16.msra.mxu1 %v2138_v26  ;;  %2023 = vmatprep.mubr.msk.f32.mxu1 %vm793_vm2, %v878_v44 }
 0x3f0   :  { %2151 = vmatprep.subr.bf16.mxu1 %v2150_v29  ;;  %v2211_v46 = vpop.eup %2210 }
 0x3f1   :  { %v880_v48 = vmul.f32 %v2211_v46, %v2201_v20  ;;  %v2213_v50 = vpop.eup %2212 }
 0x3f2   :  { %v881_v52 = vmul.f32 %v2213_v50, %v2199_v19 }
 0x3f6   :  { %2024 = vmatmul.mubr.msk.f32.vlgmr.msra.gmra.mrb[10].mxu1 %vm793_vm2, %v879_v47 }
 0x3f7   :  { %2153 = vmatpush3.bf16.msra.mxu1 %v2150_v29  ;;  %2041 = vmatprep.mubr.msk.f32.mxu1 %vm793_vm2, %v880_v48 }
 0x3f8   :  { %2163 = vmatprep.subr.bf16.mxu1 %v2162_v61 }
 0x3fe   :  { %2042 = vmatmul.mubr.msk.f32.vlgmr.msra.gmra.mrb[10].mxu1 %vm793_vm2, %v881_v52 }
 0x3ff   :  { %2165 = vmatpush3.bf16.msra.mxu1 %v2162_v61 }
 0x400   :  { %2167 = vmatprep.subr.bf16.mxu1 %v2166_v0 }
 0x403   :  { %2169 = vmatpush3.bf16.msra.mxu1 %v2166_v0 }
 0x4d1   :  { %v2043_v55 = vpop.f32.mrb[10].mxu1 }
 0x4d2   :  { %v1533_v56 = vpop.f32.mrb[11].mxu1  ;;  %v2170_v58 = vadd.f32 %v2043_v55, %v1775_v49 }
 0x4d3   :  { %v2171_v57 = vadd.f32 %v1775_v49, %v1533_v56 }
 0x4d5   :  { %2052 = vmatprep.mubr.msk.f32.mxu0 %vm45_vm0, %v2171_v57 }
 0x4d6   :  { %2053 = vmatmul.mubr.msk.f32.vlgmr.msra.gmra.mrb[16].mxu0 %vm45_vm0, %v2170_v58 }
 0x5a9   :  { %v2054_v2 = vpop.f32.mrb[16].mxu0 }
 0x5aa   :  { %v1631_v3 = vadd.f32 %v2054_v2, %v1792_v1  ;;  %v1625_v4 = vpop.f32.mrb[17].mxu0 }
 0x5ab   :  { %v1626_v5 = vadd.f32 %v1792_v1, %v1625_v4 }
 0x5ac   :  { %v1637_v8 = vmul.f32 0.70710677, %v1631_v3  ;;  %v1635_v15 = vmul.f32 0.5, %v1631_v3 }
 0x5ad   :  { %v1636_v9 = vmul.f32 0.70710677, %v1626_v5  ;;  %v1634_v13 = vmul.f32 0.5, %v1626_v5 }
 0x5ae   :  { %2214 = verf.f32 %v1637_v8 }
 0x5af   :  { %2216 = verf.f32 %v1636_v9 }
 0x5b8   :  { %v2215_v10 = vpop.eup %2214 }
 0x5b9   :  { %v2217_v11 = vpop.eup %2216  ;;  %v1641_v12 = vadd.f32 1.0, %v2215_v10 }
 0x5ba   :  { %v1640_v14 = vadd.f32 1.0, %v2217_v11 }
 0x5bb   :  { %v1643_v17 = vmul.f32 %v1641_v12, %v1635_v15 }
 0x5bc   :  { %v1642_v16 = vmul.f32 %v1640_v14, %v1634_v13 }
 0x5be   :  { %2063 = vmatprep.mubr.msk.f32.mxu1 %vm45_vm0, %v1642_v16 }
 0x5bf   :  { %2064 = vmatmul.mubr.msk.f32.vlgmr.msra.gmra.mrb[14].mxu1 %vm45_vm0, %v1643_v17 }
 0x692   :  { %v2065_v6 = vpop.f32.mrb[14].mxu1 }
 0x693   :  { %v1731_v19 = vadd.f32 %v2065_v6, %v1795_v18  ;;  %v1725_v20 = vpop.f32.mrb[15].mxu1 }
 0x694   :  { %v1726_v21 = vadd.f32 %v1795_v18, %v1725_v20 }
 0x695   :  { %v1735_v22 = vadd.f32 %v2170_v58, %v1731_v19 }
 0x696   :  { %v1734_v7 = vadd.f32 %v2171_v57, %v1726_v21 }
 0x697   :  { %1737 = vst.msk [vmem:[#allocation5 + $0x8] sm:$0xff] %vm45_vm0, %v1735_v22 }
 0x698   :  { %1736 = vst.msk [vmem:[#allocation5] sm:$0xff] %vm45_vm0, %v1734_v7 }
 0x699   :  { %2251 = shalt.err (!%p2248_p12)
}
 0x69a   :  { %s2252_s14 = scalar_lea.hbm %s2461_s2, 256 }
 0x69b   :  { %p2253_p13 = scmp.ne.s32.totalorder %s2461_s2, %s2252_s14  ;;  %p2256_p0 = scmp.lt.u32.totalorder %s2252_s14, %s2461_s2 }
 0x69d   :  { %p2258_p1 = pnand %p2256_p0, %p2253_p13 }
 0x69f   :  { %2261 = shalt.err (!%p2258_p1)
}
 0x6a0   :  { %1749 = dma.vmem_to_hbm [thread:$0]  %s1744_s10, 256, %s2461_s2, [#allocation4], %s2267_s19, %s2267_s19, %s2268_s20  }
 0x6a1   :  { %2264 = dma.done.wait [#allocation4], 256  }
 0x6a2   :  { %2265 = vsyncadd [#allocation4], 4294967040 }
 0x6a3   :  { %1753 = vsyncpa [#allocation3], 1 }
 0x6a4   :  { %1754 = vsyncpa [#allocation4], 1 }

</bundles_post_ra>
